<compile_context>
chip_gen: v7x
topology: tpu7x:2x2x1
jax: 0.10.0
libtpu: 0.0.40
codegen_flags: <defaults>
</compile_context>

<pallas_src>
import jax
import jax.numpy as jnp
from jax.experimental import pallas as pl
from jax.experimental.pallas import tpu as pltpu


def _toeplitz_conv_weights(w, width):
    """Block-Toeplitz expansion of a 'same' conv row for lane-dense matmuls.

    w: (KH, KW, Cin, Cout) -> t: (KH, width*Cin, width*Cout), with the
    left/right zero-pad columns folded into the weights (entries that would
    multiply boundary zeros are dropped), so K is exactly width*Cin and the
    kernel needs no column-padded scratch.

        (xrow @ t[kh])[q*Cout + co] = sum_{kw,ci} x[q+kw-pad, ci] * w[kh,kw,ci,co]
    """
    KH, KW, cin, cout = w.shape
    pad = (KW - 1) // 2
    p = jnp.arange(width)[None, :, None]              # input column  (1, W, 1)
    q = jnp.arange(width)[None, None, :]              # output column (1, 1, W)
    kw = jnp.arange(KW)[:, None, None]                # (KW, 1, 1)
    shift = (p == q + kw - pad).astype(w.dtype)       # (KW, W, W)
    t = jnp.einsum("jpw,kjio->kpiwo", shift, w)       # (KH, W, Cin, W, Cout)
    return t.reshape(KH, width * cin, width * cout)


def _make_fused_kernel(G, H, W, Cin, Cout, compute_dtype):
    WCin, WCout = W * Cin, W * Cout
    HP = H + 2                    # rows per halo-padded image in the stack
    ROWS = G * HP                 # scratch rows per grid step
    M = ROWS - 2                  # matmul M (G*H valid rows + 2*(G-1) garbage)

    def kernel(x_ref, t1_ref, b1_ref, t2_ref, b2_ref, o_ref, xpad, midpad):
        # x_ref  : (G, H, W*Cin)            G batch images, lane-dense
        # t1_ref : (3, W*Cin,  W*Cout)      folded block-Toeplitz weights, layer 1
        # t2_ref : (3, W*Cout, W*Cout)      folded block-Toeplitz weights, layer 2
        # b*_ref : (1, W*Cout)              biases tiled along W (f32)
        # o_ref  : (G, H, W*Cout)           lane-dense output
        # xpad   : (G*(H+2), W*Cin)  VMEM scratch (stacked, row-halo-padded input)
        # midpad : (G*(H+2), W*Cout) VMEM scratch (stacked, row-halo-padded mid)

        # Scratches persist across grid iterations; only the halo rows need to
        # be zero and the interior is fully rewritten every step, so zero once.
        @pl.when(pl.program_id(0) == 0)
        def _init():
            xpad[...] = jnp.zeros_like(xpad)
            midpad[...] = jnp.zeros_like(midpad)

        # Stack G images (each with its top/bottom zero halo row) so the three
        # shifted dots run with M = G*(H+2)-2 instead of H.
        for g in range(G):
            xpad[g * HP + 1:g * HP + 1 + H, :] = x_ref[g]

        def conv3x3(src_ref, t_ref, b_ref):
            # 3 row-shifted MXU matmuls (one per kh); f32 accumulation,
            # bias + ReLU in f32 on the VPU.
            acc = jnp.dot(src_ref[0:M, :], t_ref[0],
                          preferred_element_type=jnp.float32)
            acc += jnp.dot(src_ref[1:M + 1, :], t_ref[1],
                           preferred_element_type=jnp.float32)
            acc += jnp.dot(src_ref[2:M + 2, :], t_ref[2],
                           preferred_element_type=jnp.float32)
            return jnp.maximum(acc + b_ref[...], 0.0)          # (M, W*Cout) f32

        # Layer 1 -> intermediate stays in VMEM (never written to HBM).
        mid = conv3x3(xpad, t1_ref, b1_ref).astype(compute_dtype)
        for g in range(G):
            # Copy only the H valid rows per image; the 2 rows produced at each
            # inter-image boundary are garbage and are skipped.
            midpad[g * HP + 1:g * HP + 1 + H, :] = mid[g * HP:g * HP + H, :]

        # Layer 2 -> lane-dense unmasked stores (W*Cout = 128 at the test shape).
        out = conv3x3(midpad, t2_ref, b2_ref)
        for g in range(G):
            o_ref[g] = out[g * HP:g * HP + H, :].astype(o_ref.dtype)

    return kernel


def _pick_group_size(B, H, target_rows, min_grid_steps):
    """Largest divisor of B with G*(H+2) <= target_rows and >= min_grid_steps steps."""
    best = 1
    for g in range(1, B + 1):
        if B % g == 0 and g * (H + 2) <= target_rows and (B // g) >= min_grid_steps:
            best = g
    return best


def conv2d_block_flat(x_flat, params, *, compute_dtype=jnp.bfloat16,
                      group_size=None, target_rows=256, min_grid_steps=1):
    """Fused Conv2DBlock on lane-dense activations: (B, H, W*Cin) -> (B, H, W*Cout).

    Use this entry point when chaining blocks so activations stay in the
    lane-dense NHWC/(H, W*C) layout between pallas_calls.

    target_rows ~ 128 on v5e, ~256 on v6e/v7x (MXU M fill). On v7x pass
    min_grid_steps=2 (when B allows) so both TensorCores get grid steps.
    """
    w1, b1, w2, b2 = params
    B, H, WCin = x_flat.shape
    Cin, Cout = w1.shape[2], w1.shape[3]
    W = WCin // Cin

    G = group_size if group_size is not None else _pick_group_size(
        B, H, target_rows, min_grid_steps)
    assert B % G == 0

    xc = x_flat.astype(compute_dtype)
    t1 = _toeplitz_conv_weights(w1, W).astype(compute_dtype)       # (3, W*Cin,  W*Cout)
    t2 = _toeplitz_conv_weights(w2, W).astype(compute_dtype)       # (3, W*Cout, W*Cout)
    b1t = jnp.tile(b1, W).reshape(1, W * Cout).astype(jnp.float32)
    b2t = jnp.tile(b2, W).reshape(1, W * Cout).astype(jnp.float32)

    kernel = _make_fused_kernel(G, H, W, Cin, Cout, compute_dtype)

    return pl.pallas_call(
        kernel,
        out_shape=jax.ShapeDtypeStruct((B, H, W * Cout), x_flat.dtype),
        grid=(B // G,),
        in_specs=[
            pl.BlockSpec((G, H, W * Cin), lambda i: (i, 0, 0)),
            pl.BlockSpec((3, W * Cin, W * Cout), lambda i: (0, 0, 0)),
            pl.BlockSpec((1, W * Cout), lambda i: (0, 0)),
            pl.BlockSpec((3, W * Cout, W * Cout), lambda i: (0, 0, 0)),
            pl.BlockSpec((1, W * Cout), lambda i: (0, 0)),
        ],
        out_specs=pl.BlockSpec((G, H, W * Cout), lambda i: (i, 0, 0)),
        scratch_shapes=[
            pltpu.VMEM((G * (H + 2), W * Cin), compute_dtype),
            pltpu.VMEM((G * (H + 2), W * Cout), compute_dtype),
        ],
        compiler_params=pltpu.CompilerParams(
            dimension_semantics=("parallel",)),
    )(xc, t1, b1t, t2, b2t)


def conv2d_block(x_nchw, params, *, compute_dtype=jnp.bfloat16, **kwargs):
    """Conv2DBlock forward: relu(conv2(relu(conv1(x)))). Input/output NCHW.

    Only transposes at the boundary; prefer conv2d_block_flat when chaining
    blocks so activations stay lane-dense between kernels.
    """
    B, Cin, H, W = x_nchw.shape
    Cout = params[0].shape[-1]
    x = jnp.transpose(x_nchw, (0, 2, 3, 1)).reshape(B, H, W * Cin)
    out = conv2d_block_flat(x, params, compute_dtype=compute_dtype, **kwargs)
    out = out.reshape(B, H, W, Cout)
    return jnp.transpose(out, (0, 3, 1, 2))                        # NHWC -> NCHW


def init_params(key, in_channels, out_channels):
    """Deterministic parameter init, shapes matching nn.Conv2d(k=3)."""
    k1, k2, k3, k4 = jax.random.split(key, 4)
    fan1 = in_channels * 9
    fan2 = out_channels * 9
    w1 = jax.random.normal(k1, (3, 3, in_channels, out_channels), jnp.float32) / jnp.sqrt(fan1)
    b1 = jax.random.normal(k2, (out_channels,), jnp.float32) * 0.01
    w2 = jax.random.normal(k3, (3, 3, out_channels, out_channels), jnp.float32) / jnp.sqrt(fan2)
    b2 = jax.random.normal(k4, (out_channels,), jnp.float32) * 0.01
    return (w1, b1, w2, b2)


def _ref_forward(x_nchw, params):
    """Plain-JAX reference (lax conv), mirrors the PyTorch module."""
    w1, b1, w2, b2 = params

    def conv(x, w, b):
        w_oihw = jnp.transpose(w, (3, 2, 0, 1))
        y = jax.lax.conv_general_dilated(
            x, w_oihw, window_strides=(1, 1), padding=((1, 1), (1, 1)),
            dimension_numbers=("NCHW", "OIHW", "NCHW"))
        return jnp.maximum(y + b[None, :, None, None], 0.0)

    return conv(conv(x_nchw, w1, b1), w2, b2)


if __name__ == "__main__":
    key = jax.random.PRNGKey(0)
    kx, kp = jax.random.split(key)

    B, Cin, Cout, H, W = 2, 4, 8, 16, 16
    x = jax.random.normal(kx, (B, Cin, H, W), jnp.float32)     # NCHW, like PyTorch
    params = init_params(kp, Cin, Cout)
    ref = _ref_forward(x, params)

    # f32 compute path: tight check against the lax reference.
    fwd_f32 = jax.jit(lambda x, p: conv2d_block(x, p, compute_dtype=jnp.float32))
    out_f32 = jax.block_until_ready(fwd_f32(x, params))
    assert out_f32.shape == (B, Cout, H, W), out_f32.shape
    err_f32 = float(jnp.max(jnp.abs(out_f32 - ref)))
    assert jnp.allclose(out_f32, ref, atol=1e-4, rtol=1e-4), err_f32

    # Default bf16 MXU path (recommended on v5e/v6e/v7x): relaxed tolerance,
    # since the intermediate ReLU activation is also rounded to bf16.
    fwd_bf16 = jax.jit(lambda x, p: conv2d_block(x, p))
    out_bf16 = jax.block_until_ready(fwd_bf16(x, params))
    err_bf16 = float(jnp.max(jnp.abs(out_bf16 - ref)))
    assert jnp.allclose(out_bf16, ref, atol=5e-2, rtol=5e-2), err_bf16

    print("KERNEL_OK")
</pallas_src>

<mosaic_0001>
module attributes {stable_mosaic.version = 11 : i64} {
  func.func @kernel(%arg0: i32, %arg1: memref<2x16x64xf32, #tpu.memory_space<vmem>>, %arg2: memref<3x64x128xf32, #tpu.memory_space<vmem>>, %arg3: memref<1x128xf32, #tpu.memory_space<vmem>>, %arg4: memref<3x128x128xf32, #tpu.memory_space<vmem>>, %arg5: memref<1x128xf32, #tpu.memory_space<vmem>>, %arg6: memref<2x16x128xf32, #tpu.memory_space<vmem>>, %arg7: memref<36x64xf32, #tpu.memory_space<vmem>>, %arg8: memref<36x128xf32, #tpu.memory_space<vmem>>) attributes {dimension_semantics = [#tpu.dimension_semantics<parallel>], iteration_bounds = array<i64: 1>, scalar_prefetch = 0 : i64, scratch_operands = 2 : i64, tpu.core_type = #tpu.core_type<tc>, window_params = [{transform_indices = @transform_0, window_bounds = array<i64: 2, 16, 64>}, {pipeline_mode = #tpu.pipeline_mode<synchronous>, transform_indices = @transform_1, window_bounds = array<i64: 3, 64, 128>}, {pipeline_mode = #tpu.pipeline_mode<synchronous>, transform_indices = @transform_2, window_bounds = array<i64: 1, 128>}, {pipeline_mode = #tpu.pipeline_mode<synchronous>, transform_indices = @transform_3, window_bounds = array<i64: 3, 128, 128>}, {pipeline_mode = #tpu.pipeline_mode<synchronous>, transform_indices = @transform_4, window_bounds = array<i64: 1, 128>}, {transform_indices = @transform_5, window_bounds = array<i64: 2, 16, 128>}]} {
    %c0_i32 = arith.constant 0 : i32
    %0 = arith.cmpi eq, %arg0, %c0_i32 : i32
    %1 = arith.extui %0 : i1 to i32
    %c0_i32_0 = arith.constant 0 : i32
    %2 = arith.cmpi ne, %1, %c0_i32_0 : i32
    scf.if %2 {
      %cst_58 = arith.constant 0.000000e+00 : f32
      %59 = vector.broadcast %cst_58 : f32 to vector<36x64xf32>
      %c0_59 = arith.constant 0 : index
      %c0_60 = arith.constant 0 : index
      %60 = vector.load %arg7[%c0_59, %c0_60] : memref<36x64xf32, #tpu.memory_space<vmem>>, vector<36x64xf32>
      tpu.vector_store %arg7[%c0_59, %c0_60], %59 {strides = array<i32>} : memref<36x64xf32, #tpu.memory_space<vmem>>, vector<36x64xf32>,
      %cst_61 = arith.constant 0.000000e+00 : f32
      %61 = vector.broadcast %cst_61 : f32 to vector<36x128xf32>
      %c0_62 = arith.constant 0 : index
      %c0_63 = arith.constant 0 : index
      %62 = vector.load %arg8[%c0_62, %c0_63] : memref<36x128xf32, #tpu.memory_space<vmem>>, vector<36x128xf32>
      tpu.vector_store %arg8[%c0_62, %c0_63], %61 {strides = array<i32>} : memref<36x128xf32, #tpu.memory_space<vmem>>, vector<36x128xf32>,
    } else {
    }
    %c0 = arith.constant 0 : index
    %c0_1 = arith.constant 0 : index
    %c0_2 = arith.constant 0 : index
    %3 = vector.load %arg1[%c0, %c0_1, %c0_2] : memref<2x16x64xf32, #tpu.memory_space<vmem>>, vector<1x16x64xf32>
    %4 = vector.shape_cast %3 : vector<1x16x64xf32> to vector<16x64xf32>
    %c1 = arith.constant 1 : index
    %c0_3 = arith.constant 0 : index
    %5 = vector.load %arg7[%c1, %c0_3] : memref<36x64xf32, #tpu.memory_space<vmem>>, vector<16x64xf32>
    tpu.vector_store %arg7[%c1, %c0_3], %4 {strides = array<i32>} : memref<36x64xf32, #tpu.memory_space<vmem>>, vector<16x64xf32>,
    %c1_4 = arith.constant 1 : index
    %c0_5 = arith.constant 0 : index
    %c0_6 = arith.constant 0 : index
    %6 = vector.load %arg1[%c1_4, %c0_5, %c0_6] : memref<2x16x64xf32, #tpu.memory_space<vmem>>, vector<1x16x64xf32>
    %7 = vector.shape_cast %6 : vector<1x16x64xf32> to vector<16x64xf32>
    %c19 = arith.constant 19 : index
    %c0_7 = arith.constant 0 : index
    %8 = vector.load %arg7[%c19, %c0_7] : memref<36x64xf32, #tpu.memory_space<vmem>>, vector<16x64xf32>
    tpu.vector_store %arg7[%c19, %c0_7], %7 {strides = array<i32>} : memref<36x64xf32, #tpu.memory_space<vmem>>, vector<16x64xf32>,
    %c0_8 = arith.constant 0 : index
    %c0_9 = arith.constant 0 : index
    %9 = vector.load %arg7[%c0_8, %c0_9] : memref<36x64xf32, #tpu.memory_space<vmem>>, vector<34x64xf32>
    %c0_10 = arith.constant 0 : index
    %c0_11 = arith.constant 0 : index
    %c0_12 = arith.constant 0 : index
    %10 = vector.load %arg2[%c0_10, %c0_11, %c0_12] : memref<3x64x128xf32, #tpu.memory_space<vmem>>, vector<1x64x128xf32>
    %11 = vector.shape_cast %10 : vector<1x64x128xf32> to vector<64x128xf32>
    %cst = arith.constant dense<0.000000e+00> : vector<34x128xf32>
    %12 = tpu.matmul %9, %11, %cst {dimension_numbers = #tpu.dot_dimension_numbers<[1], [0], [0], [1], [0, 0, 1, 1], [], []>} : vector<34x64xf32>, vector<64x128xf32>, vector<34x128xf32> -> vector<34x128xf32>
    %c1_13 = arith.constant 1 : index
    %c0_14 = arith.constant 0 : index
    %13 = vector.load %arg7[%c1_13, %c0_14] : memref<36x64xf32, #tpu.memory_space<vmem>>, vector<34x64xf32>
    %c1_15 = arith.constant 1 : index
    %c0_16 = arith.constant 0 : index
    %c0_17 = arith.constant 0 : index
    %14 = vector.load %arg2[%c1_15, %c0_16, %c0_17] : memref<3x64x128xf32, #tpu.memory_space<vmem>>, vector<1x64x128xf32>
    %15 = vector.shape_cast %14 : vector<1x64x128xf32> to vector<64x128xf32>
    %cst_18 = arith.constant dense<0.000000e+00> : vector<34x128xf32>
    %16 = tpu.matmul %13, %15, %cst_18 {dimension_numbers = #tpu.dot_dimension_numbers<[1], [0], [0], [1], [0, 0, 1, 1], [], []>} : vector<34x64xf32>, vector<64x128xf32>, vector<34x128xf32> -> vector<34x128xf32>
    %17 = arith.addf %12, %16 : vector<34x128xf32>
    %c2 = arith.constant 2 : index
    %c0_19 = arith.constant 0 : index
    %18 = vector.load %arg7[%c2, %c0_19] : memref<36x64xf32, #tpu.memory_space<vmem>>, vector<34x64xf32>
    %c2_20 = arith.constant 2 : index
    %c0_21 = arith.constant 0 : index
    %c0_22 = arith.constant 0 : index
    %19 = vector.load %arg2[%c2_20, %c0_21, %c0_22] : memref<3x64x128xf32, #tpu.memory_space<vmem>>, vector<1x64x128xf32>
    %20 = vector.shape_cast %19 : vector<1x64x128xf32> to vector<64x128xf32>
    %cst_23 = arith.constant dense<0.000000e+00> : vector<34x128xf32>
    %21 = tpu.matmul %18, %20, %cst_23 {dimension_numbers = #tpu.dot_dimension_numbers<[1], [0], [0], [1], [0, 0, 1, 1], [], []>} : vector<34x64xf32>, vector<64x128xf32>, vector<34x128xf32> -> vector<34x128xf32>
    %22 = arith.addf %17, %21 : vector<34x128xf32>
    %c0_24 = arith.constant 0 : index
    %c0_25 = arith.constant 0 : index
    %23 = vector.load %arg3[%c0_24, %c0_25] : memref<1x128xf32, #tpu.memory_space<vmem>>, vector<1x128xf32>
    %24 = vector.broadcast %23 : vector<1x128xf32> to vector<34x128xf32>
    %25 = arith.addf %22, %24 : vector<34x128xf32>
    %cst_26 = arith.constant 0.000000e+00 : f32
    %26 = vector.broadcast %cst_26 : f32 to vector<34x128xf32>
    %27 = arith.maximumf %25, %26 : vector<34x128xf32>
    %28 = vector.extract_strided_slice %27 {offsets = [0, 0], sizes = [16, 128], strides = [1, 1]} : vector<34x128xf32> to vector<16x128xf32>
    %c1_27 = arith.constant 1 : index
    %c0_28 = arith.constant 0 : index
    %29 = vector.load %arg8[%c1_27, %c0_28] : memref<36x128xf32, #tpu.memory_space<vmem>>, vector<16x128xf32>
    tpu.vector_store %arg8[%c1_27, %c0_28], %28 {strides = array<i32>} : memref<36x128xf32, #tpu.memory_space<vmem>>, vector<16x128xf32>,
    %30 = vector.extract_strided_slice %27 {offsets = [18, 0], sizes = [16, 128], strides = [1, 1]} : vector<34x128xf32> to vector<16x128xf32>
    %c19_29 = arith.constant 19 : index
    %c0_30 = arith.constant 0 : index
    %31 = vector.load %arg8[%c19_29, %c0_30] : memref<36x128xf32, #tpu.memory_space<vmem>>, vector<16x128xf32>
    tpu.vector_store %arg8[%c19_29, %c0_30], %30 {strides = array<i32>} : memref<36x128xf32, #tpu.memory_space<vmem>>, vector<16x128xf32>,
    %c0_31 = arith.constant 0 : index
    %c0_32 = arith.constant 0 : index
    %32 = vector.load %arg8[%c0_31, %c0_32] : memref<36x128xf32, #tpu.memory_space<vmem>>, vector<34x128xf32>
    %c0_33 = arith.constant 0 : index
    %c0_34 = arith.constant 0 : index
    %c0_35 = arith.constant 0 : index
    %33 = vector.load %arg4[%c0_33, %c0_34, %c0_35] : memref<3x128x128xf32, #tpu.memory_space<vmem>>, vector<1x128x128xf32>
    %34 = vector.shape_cast %33 : vector<1x128x128xf32> to vector<128x128xf32>
    %cst_36 = arith.constant dense<0.000000e+00> : vector<34x128xf32>
    %35 = tpu.matmul %32, %34, %cst_36 {dimension_numbers = #tpu.dot_dimension_numbers<[1], [0], [0], [1], [0, 0, 1, 1], [], []>} : vector<34x128xf32>, vector<128x128xf32>, vector<34x128xf32> -> vector<34x128xf32>
    %c1_37 = arith.constant 1 : index
    %c0_38 = arith.constant 0 : index
    %36 = vector.load %arg8[%c1_37, %c0_38] : memref<36x128xf32, #tpu.memory_space<vmem>>, vector<34x128xf32>
    %c1_39 = arith.constant 1 : index
    %c0_40 = arith.constant 0 : index
    %c0_41 = arith.constant 0 : index
    %37 = vector.load %arg4[%c1_39, %c0_40, %c0_41] : memref<3x128x128xf32, #tpu.memory_space<vmem>>, vector<1x128x128xf32>
    %38 = vector.shape_cast %37 : vector<1x128x128xf32> to vector<128x128xf32>
    %cst_42 = arith.constant dense<0.000000e+00> : vector<34x128xf32>
    %39 = tpu.matmul %36, %38, %cst_42 {dimension_numbers = #tpu.dot_dimension_numbers<[1], [0], [0], [1], [0, 0, 1, 1], [], []>} : vector<34x128xf32>, vector<128x128xf32>, vector<34x128xf32> -> vector<34x128xf32>
    %40 = arith.addf %35, %39 : vector<34x128xf32>
    %c2_43 = arith.constant 2 : index
    %c0_44 = arith.constant 0 : index
    %41 = vector.load %arg8[%c2_43, %c0_44] : memref<36x128xf32, #tpu.memory_space<vmem>>, vector<34x128xf32>
    %c2_45 = arith.constant 2 : index
    %c0_46 = arith.constant 0 : index
    %c0_47 = arith.constant 0 : index
    %42 = vector.load %arg4[%c2_45, %c0_46, %c0_47] : memref<3x128x128xf32, #tpu.memory_space<vmem>>, vector<1x128x128xf32>
    %43 = vector.shape_cast %42 : vector<1x128x128xf32> to vector<128x128xf32>
    %cst_48 = arith.constant dense<0.000000e+00> : vector<34x128xf32>
    %44 = tpu.matmul %41, %43, %cst_48 {dimension_numbers = #tpu.dot_dimension_numbers<[1], [0], [0], [1], [0, 0, 1, 1], [], []>} : vector<34x128xf32>, vector<128x128xf32>, vector<34x128xf32> -> vector<34x128xf32>
    %45 = arith.addf %40, %44 : vector<34x128xf32>
    %c0_49 = arith.constant 0 : index
    %c0_50 = arith.constant 0 : index
    %46 = vector.load %arg5[%c0_49, %c0_50] : memref<1x128xf32, #tpu.memory_space<vmem>>, vector<1x128xf32>
    %47 = vector.broadcast %46 : vector<1x128xf32> to vector<34x128xf32>
    %48 = arith.addf %45, %47 : vector<34x128xf32>
    %cst_51 = arith.constant 0.000000e+00 : f32
    %49 = vector.broadcast %cst_51 : f32 to vector<34x128xf32>
    %50 = arith.maximumf %48, %49 : vector<34x128xf32>
    %51 = vector.extract_strided_slice %50 {offsets = [0, 0], sizes = [16, 128], strides = [1, 1]} : vector<34x128xf32> to vector<16x128xf32>
    %c0_52 = arith.constant 0 : index
    %c0_53 = arith.constant 0 : index
    %c0_54 = arith.constant 0 : index
    %52 = vector.load %arg6[%c0_52, %c0_53, %c0_54] : memref<2x16x128xf32, #tpu.memory_space<vmem>>, vector<1x16x128xf32>
    %53 = vector.shape_cast %52 : vector<1x16x128xf32> to vector<16x128xf32>
    %54 = vector.shape_cast %51 : vector<16x128xf32> to vector<1x16x128xf32>
    tpu.vector_store %arg6[%c0_52, %c0_53, %c0_54], %54 {strides = array<i32>} : memref<2x16x128xf32, #tpu.memory_space<vmem>>, vector<1x16x128xf32>,
    %55 = vector.extract_strided_slice %50 {offsets = [18, 0], sizes = [16, 128], strides = [1, 1]} : vector<34x128xf32> to vector<16x128xf32>
    %c1_55 = arith.constant 1 : index
    %c0_56 = arith.constant 0 : index
    %c0_57 = arith.constant 0 : index
    %56 = vector.load %arg6[%c1_55, %c0_56, %c0_57] : memref<2x16x128xf32, #tpu.memory_space<vmem>>, vector<1x16x128xf32>
    %57 = vector.shape_cast %56 : vector<1x16x128xf32> to vector<16x128xf32>
    %58 = vector.shape_cast %55 : vector<16x128xf32> to vector<1x16x128xf32>
    tpu.vector_store %arg6[%c1_55, %c0_56, %c0_57], %58 {strides = array<i32>} : memref<2x16x128xf32, #tpu.memory_space<vmem>>, vector<1x16x128xf32>,
    return
  }
  func.func @transform_0(%arg0: i32) -> (i32, i32, i32) {
    %c0_i32 = arith.constant 0 : i32
    %c0_i32_0 = arith.constant 0 : i32
    %c0_i32_1 = arith.constant 0 : i32
    return %arg0, %c0_i32, %c0_i32_0 : i32, i32, i32
  }
  func.func @transform_1(%arg0: i32) -> (i32, i32, i32) {
    %c0_i32 = arith.constant 0 : i32
    %c0_i32_0 = arith.constant 0 : i32
    %c0_i32_1 = arith.constant 0 : i32
    %c0_i32_2 = arith.constant 0 : i32
    return %c0_i32, %c0_i32_0, %c0_i32_1 : i32, i32, i32
  }
  func.func @transform_2(%arg0: i32) -> (i32, i32) {
    %c0_i32 = arith.constant 0 : i32
    %c0_i32_0 = arith.constant 0 : i32
    %c0_i32_1 = arith.constant 0 : i32
    return %c0_i32, %c0_i32_0 : i32, i32
  }
  func.func @transform_3(%arg0: i32) -> (i32, i32, i32) {
    %c0_i32 = arith.constant 0 : i32
    %c0_i32_0 = arith.constant 0 : i32
    %c0_i32_1 = arith.constant 0 : i32
    %c0_i32_2 = arith.constant 0 : i32
    return %c0_i32, %c0_i32_0, %c0_i32_1 : i32, i32, i32
  }
  func.func @transform_4(%arg0: i32) -> (i32, i32) {
    %c0_i32 = arith.constant 0 : i32
    %c0_i32_0 = arith.constant 0 : i32
    %c0_i32_1 = arith.constant 0 : i32
    return %c0_i32, %c0_i32_0 : i32, i32
  }
  func.func @transform_5(%arg0: i32) -> (i32, i32, i32) {
    %c0_i32 = arith.constant 0 : i32
    %c0_i32_0 = arith.constant 0 : i32
    %c0_i32_1 = arith.constant 0 : i32
    return %arg0, %c0_i32, %c0_i32_0 : i32, i32, i32
  }
}

</mosaic_0001>

<bundles_post_ra>
// kernel: tile.13
= control target key start
LH: loop header
LB: loop body
LE: loop exit
PB: predicated region body
PF: predicated region fallthrough
CT: control target
= control target key end

     0   :  { %s28_s0 = inlined_call_operand.vmem [shape: f32[8], index: 0, kind: input, shape index: {}]   ;;  %s29_s1 = inlined_call_operand.vmem [shape: f32[16,8], index: 1, kind: output, shape index: {}]  }
   0x1   :  { %v4_v0 = vld [vmem:[%s28_s0] ss:$0 sm:$0xff] }
   0x2   :  { %5 = vst [vmem:[%s29_s1] sm:$0xff] %v4_v0  ;;  %8 = vst [vmem:[%s29_s1 + $0x8] sm:$0xff] %v4_v0 }

// kernel: tile.14
= control target key start
LH: loop header
LB: loop body
LE: loop exit
PB: predicated region body
PF: predicated region fallthrough
CT: control target
= control target key end

     0   :  { %s131_s10 = smov 120   ;;  %s132_s11 = smov 104   ;;  %vm3_vm0 = vcmask 64512   ;;  %vm9_vm1 = vcmask 1048512   ;;  %vm15_vm2 = vcmask 982912   ;;  %vm21_vm3 = vcmask 917312   ;;  %s207_s0 = inlined_call_operand.vmem [shape: f32[16,8], index: 0, kind: input, shape index: {}]   ;;  %s208_s1 = inlined_call_operand.vmem [shape: f32[1,128], index: 1, kind: output, shape index: {}]  }
   0x1   :  { %v101_v0 = vld [vmem:[%s207_s0 + $0xf] sm:$0x1]   ;;  %v103_v1 = vld [vmem:[%s207_s0 + $0xd] sm:$0x1]   ;;  %v102_v2 = vld [vmem:[%s207_s0 + $0xe] sm:$0x1]  }
   0x2   :  { %7 = vrot.lane.b32.xlu0 %v101_v0, %s131_s10  ;;  %19 = vrot.lane.b32.xlu1 %v103_v1, %s132_s11  ;;  %v104_v3 = vld [vmem:[%s207_s0 + $0xc] sm:$0x1]   ;;  %s133_s16 = smov 112   ;;  %s134_s17 = smov 96   ;;  %v105_v4 = vld [vmem:[%s207_s0 + $0xb] sm:$0x1]  }
   0x3   :  { %v106_v5 = vld [vmem:[%s207_s0 + $0xa] sm:$0x1]   ;;  %v2_v6 = vld [vmem:[%s207_s0] sm:$0x1]   ;;  %s135_s24 = smov 88   ;;  %s136_s25 = smov 80  }
   0x4   :  { %4 = vst.msk [vmem:[#allocation0] sm:$0x1] %vm3_vm0, %v2_v6   ;;  %v107_v7 = vld [vmem:[%s207_s0 + $0x9] sm:$0x1]   ;;  %v108_v8 = vld [vmem:[%s207_s0 + $0x8] sm:$0x1]  }
   0x5   :  { %s137_s30 = smov 72   ;;  %s138_s2 = smov 64   ;;  %v109_v9 = vld [vmem:[%s207_s0 + $0x7] sm:$0x1]   ;;  %v110_v10 = vld [vmem:[%s207_s0 + $0x6] sm:$0x1]  }
   0x6   :  { %13 = vrot.lane.b32.xlu0 %v102_v2, %s133_s16  ;;  %25 = vrot.lane.b32.xlu1 %v104_v3, %s134_s17  ;;  %s139_s7 = smov 56   ;;  %s140_s8 = smov 48   ;;  %v111_v11 = vld [vmem:[%s207_s0 + $0x5] sm:$0x1]   ;;  %v112_v12 = vld [vmem:[%s207_s0 + $0x4] sm:$0x1]  }
   0x7   :  { %s141_s13 = smov 40   ;;  %s142_s14 = smov 32   ;;  %v113_v13 = vld [vmem:[%s207_s0 + $0x3] sm:$0x1]   ;;  %v114_v14 = vld [vmem:[%s207_s0 + $0x2] sm:$0x1]  }
   0x8   :  { %s143_s19 = smov 24   ;;  %s144_s20 = smov 16   ;;  %v115_v15 = vld [vmem:[%s207_s0 + $0x1] sm:$0x1]   ;;  %vm27_vm4 = vcmask 851712   ;;  %vm33_vm5 = vcmask 786112  }
   0x9   :  { %s145_s0 = smov 8   ;;  %vm39_vm6 = vcmask 720512   ;;  %vm45_vm7 = vcmask 654912   ;;  %vm51_vm8 = vcmask 589312   ;;  %vm57_vm9 = vcmask 523712  }
   0xa   :  { %31 = vrot.lane.b32.xlu0 %v105_v4, %s135_s24  ;;  %37 = vrot.lane.b32.xlu1 %v106_v5, %s136_s25  ;;  %vm63_vm10 = vcmask 458112   ;;  %vm69_vm11 = vcmask 392512   ;;  %vm75_vm12 = vcmask 326912   ;;  %vm81_vm13 = vcmask 261312  }
   0xb   :  { %vm87_vm14 = vcmask 195712   ;;  %vm93_vm15 = vcmask 130112  }
   0xe   :  { %43 = vrot.lane.b32.xlu0 %v107_v7, %s137_s30  ;;  %49 = vrot.lane.b32.xlu1 %v108_v8, %s138_s2 }
  0x12   :  { %55 = vrot.lane.b32.xlu0 %v109_v9, %s139_s7  ;;  %61 = vrot.lane.b32.xlu1 %v110_v10, %s140_s8 }
  0x16   :  { %67 = vrot.lane.b32.xlu0 %v111_v11, %s141_s13  ;;  %73 = vrot.lane.b32.xlu1 %v112_v12, %s142_s14 }
  0x1a   :  { %79 = vrot.lane.b32.xlu0 %v113_v13, %s143_s19  ;;  %85 = vrot.lane.b32.xlu1 %v114_v14, %s144_s20 }
  0x1e   :  { %91 = vrot.lane.b32.xlu0 %v115_v15, %s145_s0 }
  0x74   :  { %v8_v16 = vpop.permute.xlu0 %7   ;;  %v20_v17 = vpop.permute.xlu1 %19  }
  0x75   :  { %10 = vst.msk [vmem:[#allocation0] sm:$0x1] %vm9_vm1, %v8_v16  }
  0x78   :  { %v14_v18 = vpop.permute.xlu0 %13   ;;  %v26_v19 = vpop.permute.xlu1 %25  }
  0x79   :  { %16 = vst.msk [vmem:[#allocation0] sm:$0x1] %vm15_vm2, %v14_v18  }
  0x7a   :  { %22 = vst.msk [vmem:[#allocation0] sm:$0x1] %vm21_vm3, %v20_v17  }
  0x7b   :  { %28 = vst.msk [vmem:[#allocation0] sm:$0x1] %vm27_vm4, %v26_v19  }
  0x7c   :  { %v32_v20 = vpop.permute.xlu0 %31   ;;  %v38_v21 = vpop.permute.xlu1 %37  }
  0x7d   :  { %34 = vst.msk [vmem:[#allocation0] sm:$0x1] %vm33_vm5, %v32_v20  }
  0x7e   :  { %40 = vst.msk [vmem:[#allocation0] sm:$0x1] %vm39_vm6, %v38_v21  }
  0x80   :  { %v44_v22 = vpop.permute.xlu0 %43   ;;  %v50_v23 = vpop.permute.xlu1 %49  }
  0x81   :  { %46 = vst.msk [vmem:[#allocation0] sm:$0x1] %vm45_vm7, %v44_v22  }
  0x82   :  { %52 = vst.msk [vmem:[#allocation0] sm:$0x1] %vm51_vm8, %v50_v23  }
  0x84   :  { %v56_v24 = vpop.permute.xlu0 %55   ;;  %v62_v25 = vpop.permute.xlu1 %61  }
  0x85   :  { %58 = vst.msk [vmem:[#allocation0] sm:$0x1] %vm57_vm9, %v56_v24  }
  0x86   :  { %64 = vst.msk [vmem:[#allocation0] sm:$0x1] %vm63_vm10, %v62_v25  }
  0x88   :  { %v68_v26 = vpop.permute.xlu0 %67   ;;  %v74_v27 = vpop.permute.xlu1 %73  }
  0x89   :  { %70 = vst.msk [vmem:[#allocation0] sm:$0x1] %vm69_vm11, %v68_v26  }
  0x8a   :  { %76 = vst.msk [vmem:[#allocation0] sm:$0x1] %vm75_vm12, %v74_v27  }
  0x8c   :  { %v80_v28 = vpop.permute.xlu0 %79   ;;  %v86_v29 = vpop.permute.xlu1 %85  }
  0x8d   :  { %82 = vst.msk [vmem:[#allocation0] sm:$0x1] %vm81_vm13, %v80_v28  }
  0x8e   :  { %88 = vst.msk [vmem:[#allocation0] sm:$0x1] %vm87_vm14, %v86_v29  }
  0x90   :  { %v92_v30 = vpop.permute.xlu0 %91  }
  0x91   :  { %94 = vst.msk [vmem:[#allocation0] sm:$0x1] %vm93_vm15, %v92_v30  }
  0x98   :  { %v98_v31 = vld [vmem:[#allocation0] sm:$0x1] }
  0x99   :  { %100 = vst [vmem:[%s208_s1] sm:$0x1] %v98_v31 }

// kernel: _lambda_.1
= control target key start
LH: loop header
LB: loop body
LE: loop exit
PB: predicated region body
PF: predicated region fallthrough
CT: control target
= control target key end

     0   :  { %vm24_vm0 = vcmask 523264   ;;  %v1313_v0 = vmov 0.0|0.0   ;;  %v1314_v4 = vmov 0.0   ;;  %vm29_vm1 = vcmask 519168   ;;  %s1724_s1 = inlined_call_operand.vmem [shape: f32[3,64,128], index: 1, kind: input, shape index: {}]   ;;  %s1725_s0 = inlined_call_operand.vmem [shape: f32[2,16,64], index: 0, kind: input, shape index: {}]   ;;  %s1726_s3 = inlined_call_operand.vmem [shape: f32[3,128,128], index: 3, kind: input, shape index: {}]   ;;  %s1727_s2 = inlined_call_operand.vmem [shape: f32[1,128], index: 2, kind: input, shape index: {}]   ;;  %s1728_s4 = inlined_call_operand.vmem [shape: f32[1,128], index: 4, kind: input, shape index: {}]   ;;  %s1729_s5 = inlined_call_operand.vmem [shape: f32[2,16,128], index: 5, kind: output, shape index: {}]  }
   0x1   :  { %1202 = vmatprep.subr.bf16.mxu0 %v1313_v0  ;;  %v798_v1 = vld [vmem:[%s1724_s1 + $0x40] sm:$0xff]  ;;  %v799_v2 = vld [vmem:[%s1724_s1 + $0x48] sm:$0xff]  ;;  %1214 = vmatprep.subr.bf16.mxu1 %v1313_v0  ;;  %31 = vst [vmem:[#allocation3] sm:$0xff] %v1314_v4  ;;  %32 = vst [vmem:[#allocation3 + $0x8] sm:$0xff] %v1314_v4  ;;  %vm1315_vm2 = vmmov 0  }
   0x2   :  { %v51_v3 = vld [vmem:[%s1724_s1] sm:$0xff]  ;;  %33 = vst [vmem:[#allocation3 + $0x10] sm:$0xff] %v1314_v4  ;;  %34 = vst [vmem:[#allocation3 + $0x18] sm:$0xff] %v1314_v4  ;;  %v1203_v5 = vpack.c.bf16 %v799_v2, %v798_v1  ;;  %v52_v6 = vld [vmem:[%s1724_s1 + $0x8] sm:$0xff]  ;;  %984 = vmatprep.mubr.msk.f32.mxu0 %vm1315_vm2, %v1314_v4  ;;  %1015 = vmatprep.mubr.msk.f32.mxu1 %vm1315_vm2, %v1314_v4 }
   0x3   :  { %35 = vst [vmem:[#allocation3 + $0x20] sm:$0xf] %v1314_v4  ;;  %25 = vst.msk [vmem:[#allocation2] sm:$0xff] %vm24_vm0, %v1314_v4  ;;  %v800_v7 = vld [vmem:[%s1724_s1 + $0x50] sm:$0xff]  ;;  %v801_v8 = vld [vmem:[%s1724_s1 + $0x58] sm:$0xff]  ;;  %v1215_v9 = vpack.c.bf16 %v52_v6, %v51_v3 }
   0x4   :  { %26 = vst.msk [vmem:[#allocation2 + $0x8] sm:$0xff] %vm24_vm0, %v1314_v4  ;;  %27 = vst.msk [vmem:[#allocation2 + $0x10] sm:$0xff] %vm24_vm0, %v1314_v4  ;;  %v53_v10 = vld [vmem:[%s1724_s1 + $0x10] sm:$0xff]  ;;  %v54_v11 = vld [vmem:[%s1724_s1 + $0x18] sm:$0xff]  ;;  %1204 = vmatpush3.bf16.msra.mxu0 %v1203_v5  ;;  %v1206_v12 = vpack.c.bf16 %v801_v8, %v800_v7 }
   0x5   :  { %28 = vst.msk [vmem:[#allocation2 + $0x18] sm:$0xff] %vm24_vm0, %v1314_v4  ;;  %1216 = vmatpush3.bf16.msra.mxu1 %v1215_v9  ;;  %1205 = vmatprep.subr.bf16.mxu0 %v1313_v0  ;;  %v1218_v13 = vpack.c.bf16 %v54_v11, %v53_v10  ;;  %v802_v14 = vld [vmem:[%s1724_s1 + $0x60] sm:$0xff]  ;;  %v803_v15 = vld [vmem:[%s1724_s1 + $0x68] sm:$0xff]  ;;  %v796_v21 = vld [vmem:[%s1725_s0 + $0x10] sm:$0xff] }
   0x6   :  { %30 = vst.msk [vmem:[#allocation2 + $0x20] sm:$0xf] %vm29_vm1, %v1314_v4  ;;  %1217 = vmatprep.subr.bf16.mxu1 %v1313_v0  ;;  %v55_v16 = vld [vmem:[%s1724_s1 + $0x20] sm:$0xff]  ;;  %v56_v17 = vld [vmem:[%s1724_s1 + $0x28] sm:$0xff]  ;;  %v1209_v20 = vpack.c.bf16 %v803_v15, %v802_v14  ;;  %v804_v23 = vld [vmem:[%s1724_s1 + $0x70] sm:$0xff] }
   0x7   :  { %v36_v18 = vld [vmem:[%s1725_s0] sm:$0xff]  ;;  %v37_v19 = vld [vmem:[%s1725_s0 + $0x8] sm:$0xff]  ;;  %v1221_v22 = vpack.c.bf16 %v56_v17, %v55_v16  ;;  %v805_v24 = vld [vmem:[%s1724_s1 + $0x78] sm:$0xff]  ;;  %44 = vst.msk [vmem:[#allocation2 + $0x13] sm:$0xff] %vm24_vm0, %v796_v21 }
   0x8   :  { %39 = vst.msk [vmem:[#allocation2 + $0x1] sm:$0xff] %vm24_vm0, %v36_v18  ;;  %1207 = vmatpush3.bf16.msra.mxu0 %v1206_v12  ;;  %40 = vst.msk [vmem:[#allocation2 + $0x9] sm:$0xff] %vm24_vm0, %v37_v19  ;;  %v797_v25 = vld [vmem:[%s1725_s0 + $0x18] sm:$0xff]  ;;  %v57_v26 = vld [vmem:[%s1724_s1 + $0x30] sm:$0xff]  ;;  %v1212_v28 = vpack.c.bf16 %v805_v24, %v804_v23 }
   0x9   :  { %1219 = vmatpush3.bf16.msra.mxu1 %v1218_v13  ;;  %1208 = vmatprep.subr.bf16.mxu0 %v1313_v0  ;;  %v58_v27 = vld [vmem:[%s1724_s1 + $0x38] sm:$0xff]  ;;  %45 = vst.msk [vmem:[#allocation2 + $0x1b] sm:$0xff] %vm24_vm0, %v797_v25  ;;  %v816_v30 = vld [vmem:[%s1724_s1 + $0x80] sm:$0xff]  ;;  %v817_v31 = vld [vmem:[%s1724_s1 + $0x88] sm:$0xff] }
   0xa   :  { %1220 = vmatprep.subr.bf16.mxu1 %v1313_v0  ;;  %v1224_v29 = vpack.c.bf16 %v58_v27, %v57_v26  ;;  %v1227_v33 = vpack.c.bf16 %v817_v31, %v816_v30  ;;  %v818_v35 = vld [vmem:[%s1724_s1 + $0x90] sm:$0xff]  ;;  %v819_v36 = vld [vmem:[%s1724_s1 + $0x98] sm:$0xff]  ;;  %v820_v40 = vld [vmem:[%s1724_s1 + $0xa0] sm:$0xff] }
   0xb   :  { %v1230_v38 = vpack.c.bf16 %v819_v36, %v818_v35  ;;  %v821_v41 = vld [vmem:[%s1724_s1 + $0xa8] sm:$0xff]  ;;  %v822_v45 = vld [vmem:[%s1724_s1 + $0xb0] sm:$0xff]  ;;  %v823_v46 = vld [vmem:[%s1724_s1 + $0xb8] sm:$0xff] }
   0xc   :  { %1210 = vmatpush3.bf16.msra.mxu0 %v1209_v20  ;;  %v1233_v44 = vpack.c.bf16 %v821_v41, %v820_v40  ;;  %v1236_v49 = vpack.c.bf16 %v823_v46, %v822_v45  ;;  %v830_v57 = vld [vmem:[%s1726_s3 + $0x80] sm:$0xff]  ;;  %v831_v58 = vld [vmem:[%s1726_s3 + $0x88] sm:$0xff]  ;;  %v832_v60 = vld [vmem:[%s1726_s3 + $0x90] sm:$0xff] }
   0xd   :  { %1222 = vmatpush3.bf16.msra.mxu1 %v1221_v22  ;;  %1211 = vmatprep.subr.bf16.mxu0 %v1313_v0  ;;  %v1239_v59 = vpack.c.bf16 %v831_v58, %v830_v57  ;;  %v833_v61 = vld [vmem:[%s1726_s3 + $0x98] sm:$0xff]  ;;  %v834_v63 = vld [vmem:[%s1726_s3 + $0xa0] sm:$0xff]  ;;  %v835_v1 = vld [vmem:[%s1726_s3 + $0xa8] sm:$0xff] }
   0xe   :  { %1223 = vmatprep.subr.bf16.mxu1 %v1313_v0  ;;  %v61_v42 = vld [vmem:[#allocation2 + $0x11] sm:$0xff]  ;;  %v1242_v62 = vpack.c.bf16 %v833_v61, %v832_v60  ;;  %v434_v2 = vld [vmem:[%s1726_s3] sm:$0xff]  ;;  %v435_v3 = vld [vmem:[%s1726_s3 + $0x8] sm:$0xff]  ;;  %v1245_v5 = vpack.c.bf16 %v835_v1, %v834_v63 }
   0xf   :  { %v59_v32 = vld [vmem:[#allocation2 + $0x1] sm:$0xff]  ;;  %v60_v37 = vld [vmem:[#allocation2 + $0x9] sm:$0xff]  ;;  %v285_v54 = vld [vmem:[#allocation2 + $0x12] sm:$0xff]  ;;  %v1263_v6 = vpack.c.bf16 %v435_v3, %v434_v2 }
  0x10   :  { %1213 = vmatpush3.bf16.msra.mxu0 %v1212_v28  ;;  %v46_v34 = vld [vmem:[#allocation2] sm:$0xff]  ;;  %v47_v39 = vld [vmem:[#allocation2 + $0x8] sm:$0xff]  ;;  %v48_v43 = vld [vmem:[#allocation2 + $0x10] sm:$0xff] }
  0x11   :  { %1225 = vmatpush3.bf16.msra.mxu1 %v1224_v29  ;;  %1226 = vmatprep.subr.bf16.mxu0 %v1313_v0  ;;  %v62_v47 = vld [vmem:[#allocation2 + $0x19] sm:$0xff]  ;;  %v63_v50 = vld [vmem:[#allocation2 + $0x21] sm:$0x3]  ;;  %v284_v53 = vld [vmem:[#allocation2 + $0xa] sm:$0xff] }
  0x12   :  { %1238 = vmatprep.subr.bf16.mxu1 %v1313_v0  ;;  %v49_v48 = vld [vmem:[#allocation2 + $0x18] sm:$0xff]  ;;  %v50_v51 = vld [vmem:[#allocation2 + $0x20] sm:$0x3]  ;;  %v283_v52 = vld [vmem:[#allocation2 + $0x2] sm:$0xff] }
  0x13   :  { %985 = vmatmul.mubr.msk.f32.vlgmr.msra.gmra.mrb[0].mxu0 %vm24_vm0, %v59_v32  ;;  %v286_v55 = vld [vmem:[#allocation2 + $0x1a] sm:$0xff]  ;;  %v287_v56 = vld [vmem:[#allocation2 + $0x22] sm:$0x3]  ;;  %v836_v7 = vld [vmem:[%s1726_s3 + $0xb0] sm:$0xff] }
  0x14   :  { %1016 = vmatmul.mubr.msk.f32.vlgmr.msra.gmra.mrb[0].mxu1 %vm24_vm0, %v46_v34  ;;  %1228 = vmatpush3.bf16.msra.mxu0 %v1227_v33  ;;  %v837_v8 = vld [vmem:[%s1726_s3 + $0xb8] sm:$0xff]  ;;  %v436_v9 = vld [vmem:[%s1726_s3 + $0x10] sm:$0xff]  ;;  %v838_v13 = vld [vmem:[%s1726_s3 + $0xc0] sm:$0xff] }
  0x15   :  { %987 = vmatprep.mubr.msk.f32.mxu0 %vm1315_vm2, %v1314_v4  ;;  %1018 = vmatprep.mubr.msk.f32.mxu1 %vm1315_vm2, %v1314_v4  ;;  %v437_v10 = vld [vmem:[%s1726_s3 + $0x18] sm:$0xff]  ;;  %v1248_v11 = vpack.c.bf16 %v837_v8, %v836_v7  ;;  %v839_v14 = vld [vmem:[%s1726_s3 + $0xc8] sm:$0xff]  ;;  %v438_v15 = vld [vmem:[%s1726_s3 + $0x20] sm:$0xff] }
  0x16   :  { %1229 = vmatprep.subr.bf16.mxu0 %v1313_v0  ;;  %1240 = vmatpush3.bf16.msra.mxu1 %v1239_v59  ;;  %v1266_v12 = vpack.c.bf16 %v437_v10, %v436_v9  ;;  %v439_v16 = vld [vmem:[%s1726_s3 + $0x28] sm:$0xff]  ;;  %v1251_v17 = vpack.c.bf16 %v839_v14, %v838_v13  ;;  %v840_v19 = vld [vmem:[%s1726_s3 + $0xd0] sm:$0xff]  ;;  %v841_v20 = vld [vmem:[%s1726_s3 + $0xd8] sm:$0xff] }
  0x17   :  { %988 = vmatmul.mubr.msk.f32.gmra.mrb[2].mxu0 %vm24_vm0, %v60_v37  ;;  %1241 = vmatprep.subr.bf16.mxu1 %v1313_v0  ;;  %v1269_v18 = vpack.c.bf16 %v439_v16, %v438_v15  ;;  %v440_v21 = vld [vmem:[%s1726_s3 + $0x30] sm:$0xff]  ;;  %v441_v22 = vld [vmem:[%s1726_s3 + $0x38] sm:$0xff]  ;;  %v1254_v23 = vpack.c.bf16 %v841_v20, %v840_v19  ;;  %v842_v25 = vld [vmem:[%s1726_s3 + $0xe0] sm:$0xff] }
  0x18   :  { %1019 = vmatmul.mubr.msk.f32.gmra.mrb[2].mxu1 %vm24_vm0, %v47_v39  ;;  %1231 = vmatpush3.bf16.msra.mxu0 %v1230_v38  ;;  %v1272_v24 = vpack.c.bf16 %v441_v22, %v440_v21  ;;  %v843_v26 = vld [vmem:[%s1726_s3 + $0xe8] sm:$0xff]  ;;  %v442_v27 = vld [vmem:[%s1726_s3 + $0x40] sm:$0xff]  ;;  %v844_v31 = vld [vmem:[%s1726_s3 + $0xf0] sm:$0xff] }
  0x19   :  { %990 = vmatprep.mubr.msk.f32.mxu0 %vm1315_vm2, %v1314_v4  ;;  %1021 = vmatprep.mubr.msk.f32.mxu1 %vm1315_vm2, %v1314_v4  ;;  %v443_v28 = vld [vmem:[%s1726_s3 + $0x48] sm:$0xff]  ;;  %v1257_v29 = vpack.c.bf16 %v843_v26, %v842_v25  ;;  %v845_v32 = vld [vmem:[%s1726_s3 + $0xf8] sm:$0xff]  ;;  %v444_v33 = vld [vmem:[%s1726_s3 + $0x50] sm:$0xff] }
  0x1a   :  { %1232 = vmatprep.subr.bf16.mxu0 %v1313_v0  ;;  %1243 = vmatpush3.bf16.msra.mxu1 %v1242_v62  ;;  %v1275_v30 = vpack.c.bf16 %v443_v28, %v442_v27  ;;  %v445_v34 = vld [vmem:[%s1726_s3 + $0x58] sm:$0xff]  ;;  %v1260_v35 = vpack.c.bf16 %v845_v32, %v844_v31  ;;  %v446_v37 = vld [vmem:[%s1726_s3 + $0x60] sm:$0xff]  ;;  %v447_v38 = vld [vmem:[%s1726_s3 + $0x68] sm:$0xff] }
  0x1b   :  { %991 = vmatmul.mubr.msk.f32.gmra.mrb[4].mxu0 %vm24_vm0, %v61_v42  ;;  %1244 = vmatprep.subr.bf16.mxu1 %v1313_v0  ;;  %v1278_v36 = vpack.c.bf16 %v445_v34, %v444_v33  ;;  %v1281_v39 = vpack.c.bf16 %v447_v38, %v446_v37  ;;  %v448_v40 = vld [vmem:[%s1726_s3 + $0x70] sm:$0xff]  ;;  %v449_v41 = vld [vmem:[%s1726_s3 + $0x78] sm:$0xff]  ;;  %v829_v7 = vld [vmem:[%s1727_s2] ss:$0 sm:$0xff] }
  0x1c   :  { %1022 = vmatmul.mubr.msk.f32.gmra.mrb[4].mxu1 %vm24_vm0, %v48_v43  ;;  %993 = vmatprep.mubr.msk.f32.mxu0 %vm1315_vm2, %v1314_v4  ;;  %v1284_v42 = vpack.c.bf16 %v449_v41, %v448_v40  ;;  %v846_v10 = vld [vmem:[%s1726_s3 + $0x100] sm:$0xff]  ;;  %v849_v19 = vld [vmem:[%s1726_s3 + $0x118] sm:$0xff]  ;;  %v851_v27 = vld [vmem:[%s1726_s3 + $0x128] sm:$0xff] }
  0x1d   :  { %1234 = vmatpush3.bf16.msra.mxu0 %v1233_v44  ;;  %1024 = vmatprep.mubr.msk.f32.mxu1 %vm1315_vm2, %v1314_v4  ;;  %v850_v26 = vld [vmem:[%s1726_s3 + $0x120] sm:$0xff]  ;;  %v852_v34 = vld [vmem:[%s1726_s3 + $0x130] sm:$0xff] }
  0x1e   :  { %1235 = vmatprep.subr.bf16.mxu0 %v1313_v0  ;;  %1246 = vmatpush3.bf16.msra.mxu1 %v1245_v5 }
  0x1f   :  { %994 = vmatmul.mubr.msk.f32.gmra.mrb[6].mxu0 %vm24_vm0, %v62_v47  ;;  %1247 = vmatprep.subr.bf16.mxu1 %v1313_v0 }
  0x20   :  { %1025 = vmatmul.mubr.msk.f32.gmra.mrb[6].mxu1 %vm24_vm0, %v49_v48  ;;  %996 = vmatprep.mubr.msk.f32.mxu0 %vm1315_vm2, %v1314_v4 }
  0x21   :  { %1027 = vmatprep.mubr.msk.f32.mxu1 %vm1315_vm2, %v1314_v4  ;;  %1237 = vmatpush3.bf16.msra.mxu0 %v1236_v49 }
  0x22   :  { %1262 = vmatprep.subr.bf16.mxu0 %v1313_v0  ;;  %1249 = vmatpush3.bf16.msra.mxu1 %v1248_v11  ;;  %v847_v11 = vld [vmem:[%s1726_s3 + $0x108] sm:$0xff] }
  0x23   :  { %997 = vmatmul.mubr.msk.f32.gmra.mrb[8].mxu0 %vm24_vm0, %v63_v50  ;;  %1250 = vmatprep.subr.bf16.mxu1 %v1313_v0  ;;  %v1287_v14 = vpack.c.bf16 %v847_v11, %v846_v10 }
  0x24   :  { %1028 = vmatmul.mubr.msk.f32.gmra.mrb[8].mxu1 %vm24_vm0, %v50_v51  ;;  %1046 = vmatprep.mubr.msk.f32.mxu0 %vm1315_vm2, %v1314_v4 }
  0x25   :  { %1093 = vmatprep.mubr.msk.f32.mxu1 %vm1315_vm2, %v1314_v4 }
  0x26   :  { %1252 = vmatpush3.bf16.msra.mxu1 %v1251_v17 }
  0x27   :  { %1047 = vmatmul.mubr.msk.f32.vlgmr.msra.gmra.mrb[10].mxu0 %vm24_vm0, %v283_v52  ;;  %1253 = vmatprep.subr.bf16.mxu1 %v1313_v0 }
  0x28   :  { %1049 = vmatprep.mubr.msk.f32.mxu0 %vm1315_vm2, %v1314_v4  ;;  %1264 = vmatpush3.bf16.msra.mxu0 %v1263_v6 }
  0x29   :  { %1265 = vmatprep.subr.bf16.mxu0 %v1313_v0 }
  0x2a   :  { %1255 = vmatpush3.bf16.msra.mxu1 %v1254_v23 }
  0x2b   :  { %1050 = vmatmul.mubr.msk.f32.gmra.mrb[12].mxu0 %vm24_vm0, %v284_v53  ;;  %1256 = vmatprep.subr.bf16.mxu1 %v1313_v0 }
  0x2c   :  { %1052 = vmatprep.mubr.msk.f32.mxu0 %vm1315_vm2, %v1314_v4  ;;  %1267 = vmatpush3.bf16.msra.mxu0 %v1266_v12 }
  0x2d   :  { %1268 = vmatprep.subr.bf16.mxu0 %v1313_v0 }
  0x2e   :  { %1258 = vmatpush3.bf16.msra.mxu1 %v1257_v29 }
  0x2f   :  { %1053 = vmatmul.mubr.msk.f32.gmra.mrb[14].mxu0 %vm24_vm0, %v285_v54  ;;  %1259 = vmatprep.subr.bf16.mxu1 %v1313_v0 }
  0x30   :  { %1055 = vmatprep.mubr.msk.f32.mxu0 %vm1315_vm2, %v1314_v4  ;;  %1270 = vmatpush3.bf16.msra.mxu0 %v1269_v18  ;;  %v848_v18 = vld [vmem:[%s1726_s3 + $0x110] sm:$0xff] }
  0x31   :  { %1271 = vmatprep.subr.bf16.mxu0 %v1313_v0  ;;  %v1290_v22 = vpack.c.bf16 %v849_v19, %v848_v18 }
  0x32   :  { %1261 = vmatpush3.bf16.msra.mxu1 %v1260_v35  ;;  %v853_v35 = vld [vmem:[%s1726_s3 + $0x138] sm:$0xff] }
  0x33   :  { %1056 = vmatmul.mubr.msk.f32.gmra.mrb[16].mxu0 %vm24_vm0, %v286_v55  ;;  %1286 = vmatprep.subr.bf16.mxu1 %v1313_v0 }
  0x34   :  { %1058 = vmatprep.mubr.msk.f32.mxu0 %vm1315_vm2, %v1314_v4  ;;  %1273 = vmatpush3.bf16.msra.mxu0 %v1272_v24 }
  0x35   :  { %1274 = vmatprep.subr.bf16.mxu0 %v1313_v0 }
  0x37   :  { %1059 = vmatmul.mubr.msk.f32.gmra.mrb[18].mxu0 %vm24_vm0, %v287_v56 }
  0x38   :  { %1140 = vmatprep.mubr.msk.f32.mxu0 %vm1315_vm2, %v1314_v4  ;;  %1276 = vmatpush3.bf16.msra.mxu0 %v1275_v30  ;;  %v1293_v30 = vpack.c.bf16 %v851_v27, %v850_v26 }
  0x39   :  { %1277 = vmatprep.subr.bf16.mxu0 %v1313_v0 }
  0x3c   :  { %1279 = vmatpush3.bf16.msra.mxu0 %v1278_v36 }
  0x3d   :  { %1280 = vmatprep.subr.bf16.mxu0 %v1313_v0 }
  0x40   :  { %1282 = vmatpush3.bf16.msra.mxu0 %v1281_v39  ;;  %v1296_v39 = vpack.c.bf16 %v853_v35, %v852_v34 }
  0x41   :  { %1283 = vmatprep.subr.bf16.mxu0 %v1313_v0 }
  0x44   :  { %1285 = vmatpush3.bf16.msra.mxu0 %v1284_v42 }
  0xe6   :  { %v154_v43 = vpop.f32.mrb[0].mxu0 }
  0xe7   :  { %v986_v44 = vpop.f32.mrb[1].mxu0  ;;  %v259_v45 = vpop.f32.mrb[0].mxu1 }
  0xe8   :  { %v260_v46 = vadd.f32 %v259_v45, %v154_v43  ;;  %v1017_v47 = vpop.f32.mrb[1].mxu1  ;;  %v854_v44 = vld [vmem:[%s1726_s3 + $0x140] sm:$0xff]  ;;  %v855_v45 = vld [vmem:[%s1726_s3 + $0x148] sm:$0xff] }
  0xea   :  { %v159_v48 = vpop.f32.mrb[2].mxu0 }
  0xeb   :  { %v989_v49 = vpop.f32.mrb[3].mxu0  ;;  %v264_v50 = vpop.f32.mrb[2].mxu1 }
  0xec   :  { %v265_v51 = vadd.f32 %v264_v50, %v159_v48  ;;  %v1020_v52 = vpop.f32.mrb[3].mxu1  ;;  %v1299_v48 = vpack.c.bf16 %v855_v45, %v854_v44  ;;  %v856_v49 = vld [vmem:[%s1726_s3 + $0x150] sm:$0xff] }
  0xed   :  { %v857_v52 = vld [vmem:[%s1726_s3 + $0x158] sm:$0xff] }
  0xee   :  { %v164_v53 = vpop.f32.mrb[4].mxu0 }
  0xef   :  { %v992_v54 = vpop.f32.mrb[5].mxu0  ;;  %v269_v55 = vpop.f32.mrb[4].mxu1 }
  0xf0   :  { %v270_v56 = vadd.f32 %v269_v55, %v164_v53  ;;  %v1023_v57 = vpop.f32.mrb[5].mxu1  ;;  %v1302_v53 = vpack.c.bf16 %v857_v52, %v856_v49  ;;  %v858_v55 = vld [vmem:[%s1726_s3 + $0x160] sm:$0xff] }
  0xf2   :  { %v169_v58 = vpop.f32.mrb[6].mxu0 }
  0xf3   :  { %v995_v59 = vpop.f32.mrb[7].mxu0  ;;  %v274_v60 = vpop.f32.mrb[6].mxu1 }
  0xf4   :  { %v275_v61 = vadd.f32 %v274_v60, %v169_v58  ;;  %v1026_v62 = vpop.f32.mrb[7].mxu1  ;;  %v860_v58 = vld [vmem:[%s1726_s3 + $0x170] sm:$0xff] }
  0xf6   :  { %v174_v63 = vpop.f32.mrb[8].mxu0 }
  0xf7   :  { %v998_v1 = vpop.f32.mrb[9].mxu0  ;;  %v279_v2 = vpop.f32.mrb[8].mxu1 }
  0xf8   :  { %v280_v3 = vadd.f32 %v279_v2, %v174_v63  ;;  %v1029_v5 = vpop.f32.mrb[9].mxu1 }
  0xfa   :  { %v378_v6 = vpop.f32.mrb[10].mxu0 }
  0xfb   :  { %v402_v8 = vadd.f32 %v378_v6, %v260_v46  ;;  %v1048_v9 = vpop.f32.mrb[11].mxu0 }
  0xfd   :  { %v414_v12 = vadd.f32 %v829_v7, %v402_v8 }
  0xfe   :  { %v383_v13 = vpop.f32.mrb[12].mxu0 }
  0xff   :  { %v419_v15 = vmax.f32 %v414_v12, 0.0  ;;  %v403_v16 = vadd.f32 %v383_v13, %v265_v51  ;;  %v1051_v17 = vpop.f32.mrb[13].mxu0 }
 0x101   :  { %424 = vst [vmem:[#allocation3 + $0x1] sm:$0xff] %v419_v15  ;;  %v415_v20 = vadd.f32 %v829_v7, %v403_v16  ;;  %1094 = vmatmul.mubr.f32.vlgmr.msra.gmra.mrb[10].mxu1 %v419_v15 }
 0x102   :  { %v388_v21 = vpop.f32.mrb[14].mxu0  ;;  %1288 = vmatpush3.bf16.msra.mxu1 %v1287_v14  ;;  %1096 = vmatprep.mubr.msk.f32.mxu1 %vm1315_vm2, %v1314_v4 }
 0x103   :  { %v420_v23 = vmax.f32 %v415_v20, 0.0  ;;  %v404_v24 = vadd.f32 %v388_v21, %v270_v56  ;;  %v1054_v25 = vpop.f32.mrb[15].mxu0  ;;  %1289 = vmatprep.subr.bf16.mxu1 %v1313_v0  ;;  %v859_v56 = vld [vmem:[%s1726_s3 + $0x168] sm:$0xff] }
 0x104   :  { %v1305_v57 = vpack.c.bf16 %v859_v56, %v858_v55 }
 0x105   :  { %425 = vst [vmem:[#allocation3 + $0x9] sm:$0xff] %v420_v23  ;;  %v416_v28 = vadd.f32 %v829_v7, %v404_v24  ;;  %1097 = vmatmul.mubr.f32.gmra.mrb[12].mxu1 %v420_v23 }
 0x106   :  { %v393_v29 = vpop.f32.mrb[16].mxu0  ;;  %1291 = vmatpush3.bf16.msra.mxu1 %v1290_v22  ;;  %1099 = vmatprep.mubr.msk.f32.mxu1 %vm1315_vm2, %v1314_v4 }
 0x107   :  { %v421_v31 = vmax.f32 %v416_v28, 0.0  ;;  %v405_v32 = vadd.f32 %v393_v29, %v275_v61  ;;  %v1057_v33 = vpop.f32.mrb[17].mxu0  ;;  %1292 = vmatprep.subr.bf16.mxu1 %v1313_v0  ;;  %v861_v61 = vld [vmem:[%s1726_s3 + $0x178] sm:$0xff] }
 0x108   :  { %v429_v36 = vld [vmem:[#allocation3] sm:$0xff]  ;;  %v1308_v62 = vpack.c.bf16 %v861_v61, %v860_v58 }
 0x109   :  { %426 = vst [vmem:[#allocation3 + $0x11] sm:$0xfc] %v421_v31  ;;  %v417_v37 = vadd.f32 %v829_v7, %v405_v32  ;;  %1141 = vmatmul.mubr.f32.vlgmr.msra.gmra.mrb[20].mxu0 %v429_v36 }
 0x10a   :  { %v398_v38 = vpop.f32.mrb[18].mxu0  ;;  %1143 = vmatprep.mubr.msk.f32.mxu0 %vm1315_vm2, %v1314_v4  ;;  %1294 = vmatpush3.bf16.msra.mxu1 %v1293_v30  ;;  %v862_v30 = vld [vmem:[%s1728_s4] ss:$0 sm:$0xff] }
 0x10b   :  { %v422_v40 = vmax.f32 %v417_v37, 0.0  ;;  %v406_v41 = vadd.f32 %v398_v38, %v280_v3  ;;  %1295 = vmatprep.subr.bf16.mxu1 %v1313_v0  ;;  %v1060_v42 = vpop.f32.mrb[19].mxu0 }
 0x10c   :  { %v430_v43 = vld [vmem:[#allocation3 + $0x8] sm:$0xff] }
 0x10d   :  { %427 = vst [vmem:[#allocation3 + $0x19] sm:$0xff] %v422_v40  ;;  %v418_v46 = vadd.f32 %v829_v7, %v406_v41  ;;  %1144 = vmatmul.mubr.f32.gmra.mrb[22].mxu0 %v430_v43  ;;  %v652_v63 = vld [vmem:[#allocation3 + $0x2] sm:$0xff]  ;;  %v653_v1 = vld [vmem:[#allocation3 + $0xa] sm:$0xff] }
 0x10e   :  { %1146 = vmatprep.mubr.msk.f32.mxu0 %vm1315_vm2, %v1314_v4  ;;  %1297 = vmatpush3.bf16.msra.mxu1 %v1296_v39 }
 0x10f   :  { %v423_v47 = vmax.f32 %v418_v46, 0.0  ;;  %1298 = vmatprep.subr.bf16.mxu1 %v1313_v0 }
 0x110   :  { %v452_v50 = vld [vmem:[#allocation3 + $0x11] sm:$0xff] }
 0x111   :  { %v431_v51 = vld [vmem:[#allocation3 + $0x10] sm:$0xff]  ;;  %428 = vst [vmem:[#allocation3 + $0x21] sm:$0x3] %v423_v47  ;;  %1100 = vmatmul.mubr.f32.gmra.mrb[14].mxu1 %v452_v50 }
 0x112   :  { %1147 = vmatmul.mubr.f32.gmra.mrb[24].mxu0 %v431_v51  ;;  %1102 = vmatprep.mubr.msk.f32.mxu1 %vm1315_vm2, %v1314_v4 }
 0x113   :  { %1149 = vmatprep.mubr.msk.f32.mxu0 %vm1315_vm2, %v1314_v4  ;;  %1300 = vmatpush3.bf16.msra.mxu1 %v1299_v48 }
 0x114   :  { %v432_v54 = vld [vmem:[#allocation3 + $0x18] sm:$0xff]  ;;  %1301 = vmatprep.subr.bf16.mxu1 %v1313_v0 }
 0x115   :  { %1103 = vmatmul.mubr.f32.gmra.mrb[16].mxu1 %v422_v40  ;;  %v654_v2 = vld [vmem:[#allocation3 + $0x12] sm:$0xff] }
 0x116   :  { %1150 = vmatmul.mubr.f32.gmra.mrb[26].mxu0 %v432_v54  ;;  %1105 = vmatprep.mubr.msk.f32.mxu1 %vm1315_vm2, %v1314_v4 }
 0x117   :  { %1152 = vmatprep.mubr.msk.f32.mxu0 %vm1315_vm2, %v1314_v4  ;;  %1303 = vmatpush3.bf16.msra.mxu1 %v1302_v53 }
 0x118   :  { %v454_v59 = vld [vmem:[#allocation3 + $0x21] sm:$0x3]  ;;  %1304 = vmatprep.subr.bf16.mxu1 %v1313_v0 }
 0x119   :  { %v433_v60 = vld [vmem:[#allocation3 + $0x20] sm:$0x3]  ;;  %1106 = vmatmul.mubr.f32.gmra.mrb[18].mxu1 %v454_v59 }
 0x11a   :  { %1153 = vmatmul.mubr.f32.gmra.mrb[28].mxu0 %v433_v60  ;;  %1187 = vmatprep.mubr.msk.f32.mxu1 %vm1315_vm2, %v1314_v4  ;;  %v655_v3 = vld [vmem:[#allocation3 + $0x1a] sm:$0xff] }
 0x11b   :  { %1306 = vmatpush3.bf16.msra.mxu1 %v1305_v57 }
 0x11c   :  { %1307 = vmatprep.subr.bf16.mxu1 %v1313_v0  ;;  %v656_v0 = vld [vmem:[#allocation3 + $0x22] sm:$0x3] }
 0x11f   :  { %1309 = vmatpush3.bf16.msra.mxu1 %v1308_v62 }
 0x122   :  { %1188 = vmatmul.mubr.f32.vlgmr.msra.gmra.mrb[20].mxu1 %v652_v63 }
 0x123   :  { %1190 = vmatprep.mubr.msk.f32.mxu1 %vm1315_vm2, %v1314_v4 }
 0x126   :  { %1191 = vmatmul.mubr.f32.gmra.mrb[22].mxu1 %v653_v1 }
 0x127   :  { %1193 = vmatprep.mubr.msk.f32.mxu1 %vm1315_vm2, %v1314_v4 }
 0x12a   :  { %1194 = vmatmul.mubr.f32.gmra.mrb[24].mxu1 %v654_v2 }
 0x12b   :  { %1196 = vmatprep.mubr.msk.f32.mxu1 %vm1315_vm2, %v1314_v4 }
 0x12e   :  { %1197 = vmatmul.mubr.f32.gmra.mrb[26].mxu1 %v655_v3 }
 0x12f   :  { %1199 = vmatprep.mubr.msk.f32.mxu1 %vm1315_vm2, %v1314_v4 }
 0x132   :  { %1200 = vmatmul.mubr.f32.gmra.mrb[28].mxu1 %v656_v0 }
 0x1d4   :  { %v538_v5 = vpop.f32.mrb[10].mxu1 }
 0x1d5   :  { %v1095_v6 = vpop.f32.mrb[11].mxu1 }
 0x1d8   :  { %v543_v7 = vpop.f32.mrb[12].mxu1 }
 0x1d9   :  { %v1098_v8 = vpop.f32.mrb[13].mxu1 }
 0x1dc   :  { %v628_v9 = vpop.f32.mrb[20].mxu0 }
 0x1dd   :  { %v629_v10 = vadd.f32 %v628_v9, %v538_v5  ;;  %v1142_v11 = vpop.f32.mrb[21].mxu0 }
 0x1e0   :  { %v633_v12 = vpop.f32.mrb[22].mxu0 }
 0x1e1   :  { %v634_v13 = vadd.f32 %v633_v12, %v543_v7  ;;  %v1145_v14 = vpop.f32.mrb[23].mxu0 }
 0x1e4   :  { %v548_v15 = vpop.f32.mrb[14].mxu1 }
 0x1e5   :  { %v638_v16 = vpop.f32.mrb[24].mxu0  ;;  %v1101_v18 = vpop.f32.mrb[15].mxu1 }
 0x1e6   :  { %v639_v17 = vadd.f32 %v638_v16, %v548_v15  ;;  %v1148_v19 = vpop.f32.mrb[25].mxu0 }
 0x1e8   :  { %v553_v20 = vpop.f32.mrb[16].mxu1 }
 0x1e9   :  { %v643_v21 = vpop.f32.mrb[26].mxu0  ;;  %v1104_v22 = vpop.f32.mrb[17].mxu1 }
 0x1ea   :  { %v644_v4 = vadd.f32 %v643_v21, %v553_v20  ;;  %v1151_v23 = vpop.f32.mrb[27].mxu0 }
 0x1ec   :  { %v558_v24 = vpop.f32.mrb[18].mxu1 }
 0x1ed   :  { %v648_v25 = vpop.f32.mrb[28].mxu0  ;;  %v1107_v27 = vpop.f32.mrb[19].mxu1 }
 0x1ee   :  { %v649_v26 = vadd.f32 %v648_v25, %v558_v24  ;;  %v1154_v28 = vpop.f32.mrb[29].mxu0 }
 0x1f5   :  { %v740_v29 = vpop.f32.mrb[20].mxu1 }
 0x1f6   :  { %v764_v31 = vadd.f32 %v740_v29, %v629_v10  ;;  %v1189_v32 = vpop.f32.mrb[21].mxu1 }
 0x1f8   :  { %v776_v33 = vadd.f32 %v862_v30, %v764_v31 }
 0x1f9   :  { %v745_v34 = vpop.f32.mrb[22].mxu1 }
 0x1fa   :  { %v781_v35 = vmax.f32 %v776_v33, 0.0  ;;  %v765_v36 = vadd.f32 %v745_v34, %v634_v13  ;;  %v1192_v37 = vpop.f32.mrb[23].mxu1 }
 0x1fc   :  { %786 = vst [vmem:[%s1729_s5] sm:$0xff] %v781_v35  ;;  %v777_v38 = vadd.f32 %v862_v30, %v765_v36 }
 0x1fd   :  { %v750_v39 = vpop.f32.mrb[24].mxu1 }
 0x1fe   :  { %v782_v40 = vmax.f32 %v777_v38, 0.0  ;;  %v766_v41 = vadd.f32 %v750_v39, %v639_v17  ;;  %v1195_v42 = vpop.f32.mrb[25].mxu1 }
 0x200   :  { %787 = vst [vmem:[%s1729_s5 + $0x8] sm:$0xff] %v782_v40  ;;  %v778_v43 = vadd.f32 %v862_v30, %v766_v41 }
 0x201   :  { %v755_v44 = vpop.f32.mrb[26].mxu1 }
 0x202   :  { %v783_v45 = vmax.f32 %v778_v43, 0.0  ;;  %v767_v46 = vadd.f32 %v755_v44, %v644_v4  ;;  %v1198_v47 = vpop.f32.mrb[27].mxu1 }
 0x204   :  { %863 = vst [vmem:[%s1729_s5 + $0xe] sm:$0xfc] %v783_v45  ;;  %v779_v48 = vadd.f32 %v862_v30, %v767_v46 }
 0x205   :  { %v760_v49 = vpop.f32.mrb[28].mxu1 }
 0x206   :  { %v784_v50 = vmax.f32 %v779_v48, 0.0  ;;  %v768_v51 = vadd.f32 %v760_v49, %v649_v26  ;;  %v1201_v52 = vpop.f32.mrb[29].mxu1 }
 0x208   :  { %864 = vst [vmem:[%s1729_s5 + $0x16] sm:$0xff] %v784_v50  ;;  %v780_v53 = vadd.f32 %v862_v30, %v768_v51 }
 0x20a   :  { %v785_v54 = vmax.f32 %v780_v53, 0.0 }
 0x20c   :  { %865 = vst [vmem:[%s1729_s5 + $0x1e] sm:$0x3] %v785_v54 }

</bundles_post_ra>
